<compile_context>
chip_gen: v5e
topology: v5e:2x2
jax: 0.10.0
libtpu: 0.0.40
codegen_flags: <defaults>
</compile_context>

<pallas_src>
import jax
import jax.numpy as jnp
from jax.experimental import pallas as pl
from jax.experimental.pallas import tpu as pltpu

NUM_LABELS = 115   # fixed vocabulary size in the PyTorch module
N_PAD = 128        # lane-dense padded label dimension
TM_MAX = 512       # row-tile cap: fits v7x VMEM comfortably at D<=4096 fp32


def _label_embedding_kernel(x_ref, et_ref, o_ref):
    # x_ref:  (TM, D)     row tile of flattened input activations
    # et_ref: (D, 128)    transposed, zero-padded embedding table (VMEM-resident)
    # o_ref:  (TM, 128)   padded label logits tile
    o_ref[...] = jnp.dot(
        x_ref[...], et_ref[...], preferred_element_type=jnp.float32
    ).astype(o_ref.dtype)


def label_embedding_forward(x, embedding_weight, domain=None, *, compute_dtype=None):
    """Pallas equivalent of labelEmbeddingLayer.forward(input, domain).

    `domain` is accepted for signature fidelity but (as in the PyTorch code)
    is unused by the forward computation.

    compute_dtype: optionally cast x / embedding table (e.g. jnp.bfloat16) for
    the bandwidth-bound streaming side; accumulation stays f32. Default None
    keeps full f32 fidelity with the PyTorch reference.
    """
    del domain
    orig_shape = x.shape
    D = orig_shape[-1]
    assert embedding_weight.shape == (NUM_LABELS, D)

    out_dtype = x.dtype
    x2d = x.reshape(-1, D)                                   # (M, D)
    M = x2d.shape[0]

    # Transpose + zero-pad the label axis 115 -> 128 (lane-dense output).
    e_t = embedding_weight.T                                 # (D, 115)
    e_t = jnp.pad(e_t, ((0, 0), (0, N_PAD - NUM_LABELS)))    # (D, 128)

    if compute_dtype is not None:
        x2d = x2d.astype(compute_dtype)
        e_t = e_t.astype(compute_dtype)

    # Row tile: whole M for small inputs (block == full dim is always legal),
    # otherwise TM_MAX (multiple of 8) with a masked partial last tile.
    tm = M if M <= TM_MAX else TM_MAX
    grid_m = pl.cdiv(M, tm)

    # VMEM budget (double-buffered input + table + output) -> only raise the
    # scoped limit when the default (16 MiB on v5e) would be too small.
    in_isz = jnp.dtype(x2d.dtype).itemsize
    out_isz = jnp.dtype(out_dtype).itemsize
    vmem_needed = 2 * (tm * D * in_isz) + 2 * (D * N_PAD * in_isz) + 2 * (tm * N_PAD * out_isz)
    vmem_limit = None
    if vmem_needed > (14 << 20):
        vmem_limit = int(min(vmem_needed + (8 << 20), 64 << 20))

    cost = pl.CostEstimate(
        flops=2 * M * D * N_PAD,
        bytes_accessed=M * D * in_isz + D * N_PAD * in_isz + M * N_PAD * out_isz,
        transcendentals=0,
    )

    out2d = pl.pallas_call(
        _label_embedding_kernel,
        out_shape=jax.ShapeDtypeStruct((M, N_PAD), out_dtype),
        grid_spec=pltpu.PrefetchScalarGridSpec(
            num_scalar_prefetch=0,
            grid=(grid_m,),
            in_specs=[
                pl.BlockSpec((tm, D), lambda i: (i, 0)),        # row tiles of x
                pl.BlockSpec((D, N_PAD), lambda i: (0, 0)),     # table, resident
            ],
            out_specs=pl.BlockSpec((tm, N_PAD), lambda i: (i, 0)),
        ),
        compiler_params=pltpu.CompilerParams(
            dimension_semantics=("parallel",),                  # rows independent -> both v7x TCs
            vmem_limit_bytes=vmem_limit,
        ),
        cost_estimate=cost,
    )(x2d, e_t)

    # Drop the 13 padded label columns and restore the leading shape.
    return out2d[:, :NUM_LABELS].reshape(*orig_shape[:-1], NUM_LABELS)


def xavier_uniform_embedding(key, num_embeddings, embedding_dim, dtype=jnp.float32):
    # nn.init.xavier_uniform_ on a (num_embeddings, embedding_dim) weight:
    # bound = sqrt(6 / (fan_in + fan_out)).
    bound = (6.0 / (num_embeddings + embedding_dim)) ** 0.5
    return jax.random.uniform(
        key, (num_embeddings, embedding_dim), dtype=dtype, minval=-bound, maxval=bound
    )


if __name__ == "__main__":
    key = jax.random.PRNGKey(0)
    k_w, k_x = jax.random.split(key)

    B, S, D = 2, 8, 32  # small shapes: batch=2, seq=8, embedding_dim=32

    # Deterministic parameter init (synthetic; no checkpoint load).
    embedding_weight = xavier_uniform_embedding(k_w, NUM_LABELS, D)

    # Example input: activations of shape (B, S, D), matching the embedding dim
    # so matmul(input, embeddings.T) is well-defined.
    x = jax.random.normal(k_x, (B, S, D), dtype=jnp.float32)

    out = label_embedding_forward(x, embedding_weight, domain=0)
    out = jax.block_until_ready(out)

    # Sanity check against plain-JAX reference (f32 path => tight tolerance).
    ref = (x.reshape(-1, D) @ embedding_weight.T).reshape(B, S, NUM_LABELS)
    assert out.shape == (B, S, NUM_LABELS)
    assert jnp.allclose(out, ref, atol=1e-5, rtol=1e-5)

    print("KERNEL_OK")
</pallas_src>

<mosaic_0001>
module attributes {stable_mosaic.version = 11 : i64} {
  func.func @_label_embedding_kernel(%arg0: i32, %arg1: memref<16x32xf32, #tpu.memory_space<vmem>>, %arg2: memref<32x128xf32, #tpu.memory_space<vmem>>, %arg3: memref<16x128xf32, #tpu.memory_space<vmem>>) attributes {dimension_semantics = [#tpu.dimension_semantics<parallel>], iteration_bounds = array<i64: 1>, scalar_prefetch = 0 : i64, scratch_operands = 0 : i64, tpu.core_type = #tpu.core_type<tc>, window_params = [{transform_indices = @transform_0, window_bounds = array<i64: 16, 32>}, {pipeline_mode = #tpu.pipeline_mode<synchronous>, transform_indices = @transform_1, window_bounds = array<i64: 32, 128>}, {transform_indices = @transform_2, window_bounds = array<i64: 16, 128>}]} {
    %c0 = arith.constant 0 : index
    %c0_0 = arith.constant 0 : index
    %0 = vector.load %arg1[%c0, %c0_0] : memref<16x32xf32, #tpu.memory_space<vmem>>, vector<16x32xf32>
    %c0_1 = arith.constant 0 : index
    %c0_2 = arith.constant 0 : index
    %1 = vector.load %arg2[%c0_1, %c0_2] : memref<32x128xf32, #tpu.memory_space<vmem>>, vector<32x128xf32>
    %cst = arith.constant dense<0.000000e+00> : vector<16x128xf32>
    %2 = tpu.matmul %0, %1, %cst {dimension_numbers = #tpu.dot_dimension_numbers<[1], [0], [0], [1], [0, 0, 1, 1], [], []>} : vector<16x32xf32>, vector<32x128xf32>, vector<16x128xf32> -> vector<16x128xf32>
    %c0_3 = arith.constant 0 : index
    %c0_4 = arith.constant 0 : index
    %3 = vector.load %arg3[%c0_3, %c0_4] : memref<16x128xf32, #tpu.memory_space<vmem>>, vector<16x128xf32>
    tpu.vector_store %arg3[%c0_3, %c0_4], %2 {strides = array<i32>} : memref<16x128xf32, #tpu.memory_space<vmem>>, vector<16x128xf32>,
    return
  }
  func.func @transform_0(%arg0: i32) -> (i32, i32) {
    %c0_i32 = arith.constant 0 : i32
    %c0_i32_0 = arith.constant 0 : i32
    return %arg0, %c0_i32 : i32, i32
  }
  func.func @transform_1(%arg0: i32) -> (i32, i32) {
    %c0_i32 = arith.constant 0 : i32
    %c0_i32_0 = arith.constant 0 : i32
    %c0_i32_1 = arith.constant 0 : i32
    return %c0_i32, %c0_i32_0 : i32, i32
  }
  func.func @transform_2(%arg0: i32) -> (i32, i32) {
    %c0_i32 = arith.constant 0 : i32
    %c0_i32_0 = arith.constant 0 : i32
    return %arg0, %c0_i32 : i32, i32
  }
}

</mosaic_0001>

<bundles_post_ra>
// kernel: tpu_custom_call.1
= control target key start
LH: loop header
LB: loop body
LE: loop exit
PB: predicated region body
PF: predicated region fallthrough
CT: control target
= control target key end

     0   :  { %7 = vsyncpa [#allocation3], 0  ;;  %s229_s0 = inlined_call_operand.hbm [shape: f32[16,32], index: 0, kind: input, shape index: {}]   ;;  %s230_s1 = inlined_call_operand.hbm [shape: f32[32,128], index: 1, kind: input, shape index: {}]   ;;  %s231_s2 = inlined_call_operand.hbm [shape: f32[16,128], index: 2, kind: output, shape index: {}]  }
   0x1   :  { %8 = vsyncpa [#allocation6], 0 }
   0x2   :  { %9 = vsyncpa [#allocation4], 0  ;;  %s14_s11 = sshll.u32 %s229_s0, 4  ;;  %s191_s12 = smov [#allocation2]   ;;  %s15_s11 = int_to_ptr.hbm [resolvable:$true] %s14_s11 }
   0x3   :  { %s16_s13 = sshll.u32 %s191_s12, 4  ;;  %s27_s16 = sshll.u32 %s230_s1, 4  ;;  %s17_s13 = int_to_ptr.vmem [resolvable:$true] %s16_s13  ;;  %s28_s16 = int_to_ptr.hbm [resolvable:$true] %s27_s16 }
   0x4   :  { %s192_s17 = smov 128   ;;  %s193_s18 = smov 8  }
   0x5   :  { %22 = dma.hbm_to_vmem [thread:$0]  %s15_s11, 256, %s17_s13, [#allocation3], %s192_s17, %s192_s17, %s193_s18  }
   0x6   :  { %s194_s19 = smov [#allocation5]  }
   0x7   :  { %s29_s20 = sshll.u32 %s194_s19, 4  ;;  %s30_s20 = int_to_ptr.vmem [resolvable:$true] %s29_s20 }
   0x8   :  { %35 = dma.hbm_to_vmem [thread:$0]  %s28_s16, 512, %s30_s20, [#allocation6], %s192_s17, %s192_s17, %s193_s18  }
   0x9   :  { %185 = dma.done.wait [#allocation3], 256  }
   0xa   :  { %186 = vsyncadd [#allocation3], 4294967040 }
   0xb   :  { %187 = dma.done.wait [#allocation6], 512  }
   0xc   :  { %188 = vsyncadd [#allocation6], 4294966784  ;;  %v49_v0 = vld [vmem:[#allocation5 + $0x18] sm:$0xff]  ;;  %v48_v1 = vld [vmem:[#allocation5 + $0x10] sm:$0xff]  ;;  %vm50_vm0 = vcmask 261120   ;;  %s195_s0 = smov [#allocation7]  }
   0xd   :  { %69 = vmatpush.msra.mxu0 %v49_v0  ;;  %104 = vmatpush.msra.mxu1 %v49_v0  ;;  %v47_v2 = vld [vmem:[#allocation5 + $0x8] sm:$0xff]  ;;  %v46_v3 = vld [vmem:[#allocation5] sm:$0xff]  ;;  %v44_v4 = vld [vmem:[#allocation2] sm:$0xff]  ;;  %s86_s1 = sshll.u32 %s195_s0, 4  ;;  %s88_s23 = sshll.u32 %s231_s2, 4  ;;  %s87_s1 = int_to_ptr.vmem [resolvable:$true] %s86_s1  ;;  %s89_s23 = int_to_ptr.hbm [resolvable:$true] %s88_s23 }
   0xe   :  { %v45_v5 = vld [vmem:[#allocation2 + $0x8] sm:$0xff] }
   0xf   :  { %70 = vmatpush.msra.mxu0 %v48_v1  ;;  %105 = vmatpush.msra.mxu1 %v48_v1 }
  0x11   :  { %71 = vmatpush.msra.mxu0 %v47_v2  ;;  %106 = vmatpush.msra.mxu1 %v47_v2 }
  0x13   :  { %72 = vmatpush.msra.mxu0 %v46_v3  ;;  %107 = vmatpush.msra.mxu1 %v46_v3 }
  0x14   :  { %102 = vmatmul.msk.f32.vlgmr.msra.gmra.mxu0 %vm50_vm0, %v44_v4  ;;  %103 = vmatmul.msk.f32.vlgmr.msra.gmra.mxu1 %vm50_vm0, %v45_v5 }
  0x91   :  { %v74_v6 = vpop.f32.mrf.mxu0  ;;  %v77_v7 = vpop.f32.mrf.mxu1 }
  0x92   :  { %80 = vst [vmem:[#allocation7] sm:$0xff] %v74_v6 }
  0x93   :  { %81 = vst [vmem:[#allocation7 + $0x8] sm:$0xff] %v77_v7 }
  0x94   :  { %94 = dma.vmem_to_hbm [thread:$0]  %s87_s1, 256, %s89_s23, [#allocation4], %s192_s17, %s192_s17, %s193_s18  }
  0x95   :  { %189 = dma.done.wait [#allocation4], 256  }
  0x96   :  { %190 = vsyncadd [#allocation4], 4294967040 }
  0x97   :  { %99 = vsyncpa [#allocation3], 1 }
  0x98   :  { %100 = vsyncpa [#allocation6], 1 }
  0x99   :  { %101 = vsyncpa [#allocation4], 1 }

</bundles_post_ra>
